<compile_context>
chip_gen: v7x
topology: tpu7x:2x2x1
jax: 0.10.0
libtpu: 0.0.40
codegen_flags: <defaults>
</compile_context>

<pallas_src>
from functools import partial

import jax
import jax.numpy as jnp
from jax.experimental import pallas as pl
from jax.experimental.pallas import tpu as pltpu

VEC_DIM = 12     # n == m in the reference module
HIDDEN = 128     # s
M_PAD = 128      # lane-dense padded output width
B_PAD = 8        # sublane-aligned padded batch


def _rnn_kernel(x_ref, a0_ref, wu_ref, bub_ref, ww_ref, wvp_ref, bvp_ref, y_ref):
    """Single-invocation RNN forward.

    x_ref   : (L*Bp, N)  time-major flattened, batch-padded inputs (row k*Bp + b)
    a0_ref  : (Bp, S)    initial hidden state (batch-padded)
    wu_ref  : (N, S)     U weight (pre-transposed)
    bub_ref : (1, S)     folded bias  bu + bw
    ww_ref  : (S, S)     W weight (pre-transposed)
    wvp_ref : (S, 128)   V weight padded to 128 lanes
    bvp_ref : (1, 128)   V bias padded to 128 lanes
    y_ref   : (Bp, 128)  padded output
    """
    LB, _ = x_ref.shape
    Bp, _ = a0_ref.shape
    L = LB // Bp

    # One matmul for all timesteps' input projections; folded bias added once.
    pre = jnp.dot(x_ref[...], wu_ref[...],
                  preferred_element_type=jnp.float32) + bub_ref[...]      # (L*Bp, S)

    ww = ww_ref[...]
    a = a0_ref[...].astype(jnp.float32)                                   # (Bp, S)

    # L is small & static -> fully unrolled recurrence, hidden state in vregs.
    # Each slice [k*Bp:(k+1)*Bp] starts on an 8-row sublane boundary (Bp == 8).
    for k in range(L):
        h = pre[k * Bp:(k + 1) * Bp, :] + jnp.dot(
            a, ww, preferred_element_type=jnp.float32)
        a = jnp.maximum(h, 0.0)                                            # ReLU

    y = jnp.dot(a, wvp_ref[...], preferred_element_type=jnp.float32) + bvp_ref[...]
    y_ref[...] = y.astype(y_ref.dtype)                                     # lane-dense store


def prepare_params(params):
    """One-time parameter prep (outside the per-call path):
    fold the two recurrence biases and pad the output projection to 128 lanes."""
    S, M = params["wv"].shape
    wv_pad = jnp.zeros((S, M_PAD), jnp.float32).at[:, :M].set(params["wv"])
    bv_pad = jnp.zeros((1, M_PAD), jnp.float32).at[:, :M].set(params["bv"])
    bub = params["bu"] + params["bw"]
    return {
        "wu": params["wu"],      # (N, S)
        "bub": bub,              # (1, S)
        "ww": params["ww"],      # (S, S)
        "wv_pad": wv_pad,        # (S, 128)
        "bv_pad": bv_pad,        # (1, 128)
    }


@partial(jax.jit, static_argnames=("m",))
def air_model_forward(x, a0, prep, m=VEC_DIM):
    """x: (B, L, N) float32, a0: (B, S), prep: output of prepare_params."""
    B, L, N = x.shape
    S = prep["ww"].shape[0]
    b_pad = max(B_PAD, -(-B // B_PAD) * B_PAD)

    # Pad batch to a sublane multiple and flatten time-major: row k*b_pad + b.
    # (Tiny arrays; this is the only remaining per-call pre-op.)
    x_p = jnp.zeros((b_pad, L, N), x.dtype).at[:B].set(x)
    a0_p = jnp.zeros((b_pad, S), jnp.float32).at[:B].set(a0)
    x_2d = jnp.transpose(x_p, (1, 0, 2)).reshape(L * b_pad, N)

    vmem = lambda: pl.BlockSpec(memory_space=pltpu.MemorySpace.VMEM)

    y_pad = pl.pallas_call(
        _rnn_kernel,
        out_shape=jax.ShapeDtypeStruct((b_pad, M_PAD), jnp.float32),
        in_specs=[vmem() for _ in range(7)],
        out_specs=vmem(),
    )(x_2d, a0_p, prep["wu"], prep["bub"], prep["ww"],
      prep["wv_pad"], prep["bv_pad"])

    return y_pad[:B, :m]


def init_params(key, n=VEC_DIM, s=HIDDEN, m=VEC_DIM):
    """Deterministic PyTorch-Linear-style init (uniform +-1/sqrt(fan_in))."""
    ks = jax.random.split(key, 6)

    def lin(kw, kb, fan_in, fan_out):
        bound = 1.0 / jnp.sqrt(fan_in)
        w = jax.random.uniform(kw, (fan_in, fan_out), jnp.float32, -bound, bound)
        b = jax.random.uniform(kb, (1, fan_out), jnp.float32, -bound, bound)
        return w, b

    wu, bu = lin(ks[0], ks[1], n, s)
    ww, bw = lin(ks[2], ks[3], s, s)
    wv, bv = lin(ks[4], ks[5], s, m)
    return {"wu": wu, "bu": bu, "ww": ww, "bw": bw, "wv": wv, "bv": bv}


def reference_forward(x, a0, p):
    a = a0
    for k in range(x.shape[1]):
        a = jnp.maximum(x[:, k, :] @ p["wu"] + p["bu"] + a @ p["ww"] + p["bw"], 0.0)
    return a @ p["wv"] + p["bv"]


if __name__ == "__main__":
    key = jax.random.PRNGKey(0)
    k_x, k_a0, k_p = jax.random.split(key, 3)

    B, L, N = 2, 8, VEC_DIM
    x = jax.random.normal(k_x, (B, L, N), jnp.float32)
    # torch.rand(B, s) analogue — deterministic uniform [0, 1), made explicit.
    a0 = jax.random.uniform(k_a0, (B, HIDDEN), jnp.float32)

    params = init_params(k_p)
    prep = prepare_params(params)          # one-time: pad V, fold biases
    jax.block_until_ready(prep)

    y = air_model_forward(x, a0, prep, m=VEC_DIM)
    jax.block_until_ready(y)

    y_ref = reference_forward(x, a0, params)
    assert y.shape == (B, VEC_DIM)
    assert jnp.allclose(y, y_ref, atol=1e-4, rtol=1e-4)

    print("KERNEL_OK")
</pallas_src>

<mosaic_0001>
module attributes {stable_mosaic.version = 11 : i64} {
  func.func @_rnn_kernel(%arg0: memref<64x12xf32, #tpu.memory_space<vmem>>, %arg1: memref<8x128xf32, #tpu.memory_space<vmem>>, %arg2: memref<12x128xf32, #tpu.memory_space<vmem>>, %arg3: memref<1x128xf32, #tpu.memory_space<vmem>>, %arg4: memref<128x128xf32, #tpu.memory_space<vmem>>, %arg5: memref<128x128xf32, #tpu.memory_space<vmem>>, %arg6: memref<1x128xf32, #tpu.memory_space<vmem>>, %arg7: memref<8x128xf32, #tpu.memory_space<vmem>>) attributes {dimension_semantics = [], scalar_prefetch = 0 : i64, scratch_operands = 0 : i64, tpu.core_type = #tpu.core_type<tc>} {
    %c0 = arith.constant 0 : index
    %c0_0 = arith.constant 0 : index
    %0 = vector.load %arg0[%c0, %c0_0] : memref<64x12xf32, #tpu.memory_space<vmem>>, vector<64x12xf32>
    %c0_1 = arith.constant 0 : index
    %c0_2 = arith.constant 0 : index
    %1 = vector.load %arg2[%c0_1, %c0_2] : memref<12x128xf32, #tpu.memory_space<vmem>>, vector<12x128xf32>
    %cst = arith.constant dense<0.000000e+00> : vector<64x128xf32>
    %2 = tpu.matmul %0, %1, %cst {dimension_numbers = #tpu.dot_dimension_numbers<[1], [0], [0], [1], [0, 0, 1, 1], [], []>} : vector<64x12xf32>, vector<12x128xf32>, vector<64x128xf32> -> vector<64x128xf32>
    %c0_3 = arith.constant 0 : index
    %c0_4 = arith.constant 0 : index
    %3 = vector.load %arg3[%c0_3, %c0_4] : memref<1x128xf32, #tpu.memory_space<vmem>>, vector<1x128xf32>
    %4 = vector.broadcast %3 : vector<1x128xf32> to vector<64x128xf32>
    %5 = arith.addf %2, %4 : vector<64x128xf32>
    %c0_5 = arith.constant 0 : index
    %c0_6 = arith.constant 0 : index
    %6 = vector.load %arg4[%c0_5, %c0_6] : memref<128x128xf32, #tpu.memory_space<vmem>>, vector<128x128xf32>
    %c0_7 = arith.constant 0 : index
    %c0_8 = arith.constant 0 : index
    %7 = vector.load %arg1[%c0_7, %c0_8] : memref<8x128xf32, #tpu.memory_space<vmem>>, vector<8x128xf32>
    %8 = vector.extract_strided_slice %5 {offsets = [0, 0], sizes = [8, 128], strides = [1, 1]} : vector<64x128xf32> to vector<8x128xf32>
    %cst_9 = arith.constant dense<0.000000e+00> : vector<8x128xf32>
    %9 = tpu.matmul %7, %6, %cst_9 {dimension_numbers = #tpu.dot_dimension_numbers<[1], [0], [0], [1], [0, 0, 1, 1], [], []>} : vector<8x128xf32>, vector<128x128xf32>, vector<8x128xf32> -> vector<8x128xf32>
    %10 = arith.addf %8, %9 : vector<8x128xf32>
    %cst_10 = arith.constant 0.000000e+00 : f32
    %11 = vector.broadcast %cst_10 : f32 to vector<8x128xf32>
    %12 = arith.maximumf %10, %11 : vector<8x128xf32>
    %13 = vector.extract_strided_slice %5 {offsets = [8, 0], sizes = [8, 128], strides = [1, 1]} : vector<64x128xf32> to vector<8x128xf32>
    %cst_11 = arith.constant dense<0.000000e+00> : vector<8x128xf32>
    %14 = tpu.matmul %12, %6, %cst_11 {dimension_numbers = #tpu.dot_dimension_numbers<[1], [0], [0], [1], [0, 0, 1, 1], [], []>} : vector<8x128xf32>, vector<128x128xf32>, vector<8x128xf32> -> vector<8x128xf32>
    %15 = arith.addf %13, %14 : vector<8x128xf32>
    %cst_12 = arith.constant 0.000000e+00 : f32
    %16 = vector.broadcast %cst_12 : f32 to vector<8x128xf32>
    %17 = arith.maximumf %15, %16 : vector<8x128xf32>
    %18 = vector.extract_strided_slice %5 {offsets = [16, 0], sizes = [8, 128], strides = [1, 1]} : vector<64x128xf32> to vector<8x128xf32>
    %cst_13 = arith.constant dense<0.000000e+00> : vector<8x128xf32>
    %19 = tpu.matmul %17, %6, %cst_13 {dimension_numbers = #tpu.dot_dimension_numbers<[1], [0], [0], [1], [0, 0, 1, 1], [], []>} : vector<8x128xf32>, vector<128x128xf32>, vector<8x128xf32> -> vector<8x128xf32>
    %20 = arith.addf %18, %19 : vector<8x128xf32>
    %cst_14 = arith.constant 0.000000e+00 : f32
    %21 = vector.broadcast %cst_14 : f32 to vector<8x128xf32>
    %22 = arith.maximumf %20, %21 : vector<8x128xf32>
    %23 = vector.extract_strided_slice %5 {offsets = [24, 0], sizes = [8, 128], strides = [1, 1]} : vector<64x128xf32> to vector<8x128xf32>
    %cst_15 = arith.constant dense<0.000000e+00> : vector<8x128xf32>
    %24 = tpu.matmul %22, %6, %cst_15 {dimension_numbers = #tpu.dot_dimension_numbers<[1], [0], [0], [1], [0, 0, 1, 1], [], []>} : vector<8x128xf32>, vector<128x128xf32>, vector<8x128xf32> -> vector<8x128xf32>
    %25 = arith.addf %23, %24 : vector<8x128xf32>
    %cst_16 = arith.constant 0.000000e+00 : f32
    %26 = vector.broadcast %cst_16 : f32 to vector<8x128xf32>
    %27 = arith.maximumf %25, %26 : vector<8x128xf32>
    %28 = vector.extract_strided_slice %5 {offsets = [32, 0], sizes = [8, 128], strides = [1, 1]} : vector<64x128xf32> to vector<8x128xf32>
    %cst_17 = arith.constant dense<0.000000e+00> : vector<8x128xf32>
    %29 = tpu.matmul %27, %6, %cst_17 {dimension_numbers = #tpu.dot_dimension_numbers<[1], [0], [0], [1], [0, 0, 1, 1], [], []>} : vector<8x128xf32>, vector<128x128xf32>, vector<8x128xf32> -> vector<8x128xf32>
    %30 = arith.addf %28, %29 : vector<8x128xf32>
    %cst_18 = arith.constant 0.000000e+00 : f32
    %31 = vector.broadcast %cst_18 : f32 to vector<8x128xf32>
    %32 = arith.maximumf %30, %31 : vector<8x128xf32>
    %33 = vector.extract_strided_slice %5 {offsets = [40, 0], sizes = [8, 128], strides = [1, 1]} : vector<64x128xf32> to vector<8x128xf32>
    %cst_19 = arith.constant dense<0.000000e+00> : vector<8x128xf32>
    %34 = tpu.matmul %32, %6, %cst_19 {dimension_numbers = #tpu.dot_dimension_numbers<[1], [0], [0], [1], [0, 0, 1, 1], [], []>} : vector<8x128xf32>, vector<128x128xf32>, vector<8x128xf32> -> vector<8x128xf32>
    %35 = arith.addf %33, %34 : vector<8x128xf32>
    %cst_20 = arith.constant 0.000000e+00 : f32
    %36 = vector.broadcast %cst_20 : f32 to vector<8x128xf32>
    %37 = arith.maximumf %35, %36 : vector<8x128xf32>
    %38 = vector.extract_strided_slice %5 {offsets = [48, 0], sizes = [8, 128], strides = [1, 1]} : vector<64x128xf32> to vector<8x128xf32>
    %cst_21 = arith.constant dense<0.000000e+00> : vector<8x128xf32>
    %39 = tpu.matmul %37, %6, %cst_21 {dimension_numbers = #tpu.dot_dimension_numbers<[1], [0], [0], [1], [0, 0, 1, 1], [], []>} : vector<8x128xf32>, vector<128x128xf32>, vector<8x128xf32> -> vector<8x128xf32>
    %40 = arith.addf %38, %39 : vector<8x128xf32>
    %cst_22 = arith.constant 0.000000e+00 : f32
    %41 = vector.broadcast %cst_22 : f32 to vector<8x128xf32>
    %42 = arith.maximumf %40, %41 : vector<8x128xf32>
    %43 = vector.extract_strided_slice %5 {offsets = [56, 0], sizes = [8, 128], strides = [1, 1]} : vector<64x128xf32> to vector<8x128xf32>
    %cst_23 = arith.constant dense<0.000000e+00> : vector<8x128xf32>
    %44 = tpu.matmul %42, %6, %cst_23 {dimension_numbers = #tpu.dot_dimension_numbers<[1], [0], [0], [1], [0, 0, 1, 1], [], []>} : vector<8x128xf32>, vector<128x128xf32>, vector<8x128xf32> -> vector<8x128xf32>
    %45 = arith.addf %43, %44 : vector<8x128xf32>
    %cst_24 = arith.constant 0.000000e+00 : f32
    %46 = vector.broadcast %cst_24 : f32 to vector<8x128xf32>
    %47 = arith.maximumf %45, %46 : vector<8x128xf32>
    %c0_25 = arith.constant 0 : index
    %c0_26 = arith.constant 0 : index
    %48 = vector.load %arg5[%c0_25, %c0_26] : memref<128x128xf32, #tpu.memory_space<vmem>>, vector<128x128xf32>
    %cst_27 = arith.constant dense<0.000000e+00> : vector<8x128xf32>
    %49 = tpu.matmul %47, %48, %cst_27 {dimension_numbers = #tpu.dot_dimension_numbers<[1], [0], [0], [1], [0, 0, 1, 1], [], []>} : vector<8x128xf32>, vector<128x128xf32>, vector<8x128xf32> -> vector<8x128xf32>
    %c0_28 = arith.constant 0 : index
    %c0_29 = arith.constant 0 : index
    %50 = vector.load %arg6[%c0_28, %c0_29] : memref<1x128xf32, #tpu.memory_space<vmem>>, vector<1x128xf32>
    %51 = vector.broadcast %50 : vector<1x128xf32> to vector<8x128xf32>
    %52 = arith.addf %49, %51 : vector<8x128xf32>
    %c0_30 = arith.constant 0 : index
    %c0_31 = arith.constant 0 : index
    %53 = vector.load %arg7[%c0_30, %c0_31] : memref<8x128xf32, #tpu.memory_space<vmem>>, vector<8x128xf32>
    tpu.vector_store %arg7[%c0_30, %c0_31], %52 {strides = array<i32>} : memref<8x128xf32, #tpu.memory_space<vmem>>, vector<8x128xf32>,
    return
  }
}

</mosaic_0001>

<bundles_post_ra>
// kernel: air_model_forward.1
= control target key start
LH: loop header
LB: loop body
LE: loop exit
PB: predicated region body
PF: predicated region fallthrough
CT: control target
= control target key end

     0   :  { %12 = vsyncpa [#allocation3], 0  ;;  %s1641_s24 = smov [#allocation2]   ;;  %s1993_s0 = inlined_call_operand.vmem [shape: f32[64,12], index: 0, kind: input, shape index: {}]   ;;  %s1994_s1 = inlined_call_operand.vmem [shape: f32[8,128], index: 1, kind: input, shape index: {}]   ;;  %s1995_s2 = inlined_call_operand.vmem [shape: f32[12,128], index: 2, kind: input, shape index: {}]   ;;  %s1996_s3 = inlined_call_operand.vmem [shape: f32[1,128], index: 3, kind: input, shape index: {}]   ;;  %s1997_s4 = inlined_call_operand.vmem [shape: f32[128,128], index: 4, kind: input, shape index: {}]   ;;  %s1998_s5 = inlined_call_operand.hbm [shape: f32[128,128], index: 5, kind: input, shape index: {}]   ;;  %s1999_s6 = inlined_call_operand.vmem [shape: f32[1,128], index: 6, kind: input, shape index: {}]   ;;  %s2000_s7 = inlined_call_operand.vmem [shape: f32[8,128], index: 7, kind: output, shape index: {}]  }
   0x1   :  { %s28_s25 = sshll.u32 %s1641_s24, 4  ;;  %s1617_s28 = scalar_lea.hbm %s1998_s5, 2048  ;;  %s29_s25 = int_to_ptr.vmem [resolvable:$true] %s28_s25 }
   0x2   :  { %p1618_p0 = scmp.ne.s32.totalorder %s1998_s5, %s1617_s28  ;;  %p1621_p1 = scmp.lt.u32.totalorder %s1617_s28, %s1998_s5 }
   0x4   :  { %p1623_p2 = pnand %p1621_p1, %p1618_p0 }
   0x6   :  { %1626 = shalt.err (!%p1623_p2)
}
   0x7   :  { %s1627_s10 = scalar_lea.vmem %s29_s25, 2048  ;;  %p1632_p4 = scmp.lt.s32.totalorder %s29_s25, %s29_s25 }
   0x8   :  { %p1628_p3 = scmp.ne.s32.totalorder %s29_s25, %s1627_s10  ;;  %p1633_p5 = scmp.lt.s32.totalorder %s1627_s10, %s1627_s10 }
   0xa   :  { %p1634_p6 = por %p1633_p5, %p1632_p4 }
   0xc   :  { %p1635_p7 = pnand %p1634_p6, %p1628_p3 }
   0xe   :  { %1638 = shalt.err (!%p1635_p7)
}
   0xf   :  { %s1642_s11 = smov 128   ;;  %s1643_s12 = smov 8  }
  0x10   :  { %34 = dma.hbm_to_vmem [thread:$0]  %s1998_s5, 2048, %s29_s25, [#allocation3], %s1642_s11, %s1642_s11, %s1643_s12  }
  0x11   :  { %1639 = dma.done.wait [#allocation3], 2048  }
  0x12   :  { %1640 = vsyncadd [#allocation3], 4294965248  ;;  %v1644_v0 = vmov 0.0|0.0   ;;  %vm1645_vm0 = vmmov 0   ;;  %v1646_v1 = vmov 0.0   ;;  %v191_v2 = vld [vmem:[%s1997_s4] sm:$0xff] }
  0x13   :  { %1394 = vmatprep.subr.bf16.mxu1 %v1644_v0  ;;  %1105 = vmatprep.mubr.msk.f32.mxu1 %vm1645_vm0, %v1646_v1  ;;  %v192_v3 = vld [vmem:[%s1997_s4 + $0x8] sm:$0xff]  ;;  %v193_v4 = vld [vmem:[%s1997_s4 + $0x10] sm:$0xff]  ;;  %vm82_vm1 = vcmask 1043456   ;;  %v194_v6 = vld [vmem:[%s1997_s4 + $0x18] sm:$0xff]  ;;  %vm1647_vm2 = vmmov 1   ;;  %vm57_vm4 = vcmask 97280  }
  0x14   :  { %v1712_v5 = vpack.c.bf16 %v192_v3, %v191_v2  ;;  %v1718_v7 = vpack.c.bf16 %v194_v6, %v193_v4  ;;  %v195_v8 = vld [vmem:[%s1997_s4 + $0x20] sm:$0xff]  ;;  %vm1389_vm3 = vmpackc.low %vm82_vm1, %vm1647_vm2  ;;  %v196_v9 = vld [vmem:[%s1997_s4 + $0x28] sm:$0xff] }
  0x15   :  { %v48_v10 = vld [vmem:[%s1995_s2] sm:$0xff]  ;;  %v49_v11 = vld [vmem:[%s1995_s2 + $0x8] sm:$0xf]  ;;  %v1738_v14 = vpack.c.bf16 %v196_v9, %v195_v8  ;;  %v197_v15 = vld [vmem:[%s1997_s4 + $0x30] sm:$0xff] }
  0x16   :  { %1396 = vmatpush3.bf16.msra.mxu1 %v1712_v5  ;;  %v1388_v12 = vpack.c.bf16 %v49_v11, %v48_v10  ;;  %v40_v13 = vld [vmem:[%s1993_s0] sm:$0xff]  ;;  %v198_v16 = vld [vmem:[%s1997_s4 + $0x38] sm:$0xff]  ;;  %v41_v17 = vld [vmem:[%s1993_s0 + $0x8] sm:$0xff] }
  0x17   :  { %1397 = vmatprep.subr.bf16.mxu1 %v1644_v0  ;;  %1061 = vmatprep.mubr.msk.f32.mxu0 %vm57_vm4, %v40_v13  ;;  %v42_v18 = vld [vmem:[%s1993_s0 + $0x10] sm:$0xff]  ;;  %v1755_v19 = vpack.c.bf16 %v198_v16, %v197_v15  ;;  %v199_v20 = vld [vmem:[%s1997_s4 + $0x40] sm:$0xff]  ;;  %v200_v21 = vld [vmem:[%s1997_s4 + $0x48] sm:$0xff] }
  0x18   :  { %1390 = vmatprep.subr.msk.bf16.mxu0 %vm1389_vm3, %v1388_v12  ;;  %v43_v22 = vld [vmem:[%s1993_s0 + $0x18] sm:$0xff]  ;;  %v44_v23 = vld [vmem:[%s1993_s0 + $0x20] sm:$0xff]  ;;  %v1775_v24 = vpack.c.bf16 %v200_v21, %v199_v20  ;;  %v201_v25 = vld [vmem:[%s1997_s4 + $0x50] sm:$0xff] }
  0x19   :  { %1393 = vmatpush3.bf16.msk.msra.mxu0 %vm1389_vm3, %v1388_v12  ;;  %v202_v26 = vld [vmem:[%s1997_s4 + $0x58] sm:$0xff]  ;;  %v203_v28 = vld [vmem:[%s1997_s4 + $0x60] sm:$0xff]  ;;  %v204_v29 = vld [vmem:[%s1997_s4 + $0x68] sm:$0xff] }
  0x1a   :  { %1399 = vmatpush3.bf16.msra.mxu1 %v1718_v7  ;;  %1418 = vmatprep.subr.bf16.mxu0 %v1644_v0  ;;  %v1789_v27 = vpack.c.bf16 %v202_v26, %v201_v25  ;;  %v1801_v30 = vpack.c.bf16 %v204_v29, %v203_v28  ;;  %v205_v31 = vld [vmem:[%s1997_s4 + $0x70] sm:$0xff]  ;;  %v206_v32 = vld [vmem:[%s1997_s4 + $0x78] sm:$0xff]  ;;  %v207_v34 = vld [vmem:[%s1994_s1] sm:$0xff] }
  0x1b   :  { %1400 = vmatprep.subr.bf16.mxu1 %v1644_v0  ;;  %v1813_v33 = vpack.c.bf16 %v206_v32, %v205_v31  ;;  %v45_v35 = vld [vmem:[%s1993_s0 + $0x28] sm:$0xff]  ;;  %v46_v36 = vld [vmem:[%s1993_s0 + $0x30] sm:$0xff]  ;;  %v47_v37 = vld [vmem:[%s1993_s0 + $0x38] sm:$0xff] }
  0x1c   :  { %1062 = vmatmul.mubr.msk.f32.vlgmr.msra.gmra.mrb[0].mxu0 %vm57_vm4, %v41_v17  ;;  %v1866_v42 = vld [vmem:[%s1996_s3] ss:$0 sm:$0xff]  ;;  %v785_v16 = vld [vmem:[#allocation2 + $0x8] sm:$0xff]  ;;  %v786_v17 = vld [vmem:[#allocation2 + $0x10] sm:$0xff] }
  0x1d   :  { %1420 = vmatpush3.bf16.msra.mxu0 %v1712_v5  ;;  %1064 = vmatprep.mubr.msk.f32.mxu0 %vm57_vm4, %v42_v18  ;;  %v784_v15 = vld [vmem:[#allocation2] sm:$0xff]  ;;  %v791_v25 = vld [vmem:[#allocation2 + $0x38] sm:$0xff]  ;;  %v794_v29 = vld [vmem:[#allocation2 + $0x50] sm:$0xff] }
  0x1e   :  { %1402 = vmatpush3.bf16.msra.mxu1 %v1738_v14  ;;  %1421 = vmatprep.subr.bf16.mxu0 %v1644_v0  ;;  %v1587_v18 = vpack.c.bf16 %v785_v16, %v784_v15  ;;  %v788_v21 = vld [vmem:[#allocation2 + $0x20] sm:$0xff] }
  0x1f   :  { %1403 = vmatprep.subr.bf16.mxu1 %v1644_v0  ;;  %v796_v32 = vld [vmem:[#allocation2 + $0x60] sm:$0xff] }
  0x20   :  { %1065 = vmatmul.mubr.msk.f32.gmra.mrb[2].mxu0 %vm57_vm4, %v43_v22  ;;  %v789_v22 = vld [vmem:[#allocation2 + $0x28] sm:$0xff] }
  0x21   :  { %1423 = vmatpush3.bf16.msra.mxu0 %v1718_v7  ;;  %1067 = vmatprep.mubr.msk.f32.mxu0 %vm57_vm4, %v44_v23  ;;  %v1593_v23 = vpack.c.bf16 %v789_v22, %v788_v21 }
  0x22   :  { %1405 = vmatpush3.bf16.msra.mxu1 %v1755_v19  ;;  %1424 = vmatprep.subr.bf16.mxu0 %v1644_v0 }
  0x23   :  { %1406 = vmatprep.subr.bf16.mxu1 %v1644_v0 }
  0x24   :  { %1068 = vmatmul.mubr.msk.f32.gmra.mrb[4].mxu0 %vm57_vm4, %v45_v35 }
  0x25   :  { %1426 = vmatpush3.bf16.msra.mxu0 %v1738_v14  ;;  %1070 = vmatprep.mubr.msk.f32.mxu0 %vm57_vm4, %v46_v36 }
  0x26   :  { %1408 = vmatpush3.bf16.msra.mxu1 %v1775_v24  ;;  %1427 = vmatprep.subr.bf16.mxu0 %v1644_v0 }
  0x27   :  { %1409 = vmatprep.subr.bf16.mxu1 %v1644_v0 }
  0x28   :  { %1071 = vmatmul.mubr.msk.f32.gmra.mrb[6].mxu0 %vm57_vm4, %v47_v37 }
  0x29   :  { %1429 = vmatpush3.bf16.msra.mxu0 %v1755_v19  ;;  %1140 = vmatprep.mubr.msk.f32.mxu0 %vm1645_vm0, %v1646_v1 }
  0x2a   :  { %1411 = vmatpush3.bf16.msra.mxu1 %v1789_v27  ;;  %1430 = vmatprep.subr.bf16.mxu0 %v1644_v0 }
  0x2b   :  { %1412 = vmatprep.subr.bf16.mxu1 %v1644_v0 }
  0x2d   :  { %1432 = vmatpush3.bf16.msra.mxu0 %v1775_v24 }
  0x2e   :  { %1414 = vmatpush3.bf16.msra.mxu1 %v1801_v30  ;;  %1433 = vmatprep.subr.bf16.mxu0 %v1644_v0 }
  0x2f   :  { %1415 = vmatprep.subr.bf16.mxu1 %v1644_v0 }
  0x31   :  { %1435 = vmatpush3.bf16.msra.mxu0 %v1789_v27 }
  0x32   :  { %1417 = vmatpush3.bf16.msra.mxu1 %v1813_v33  ;;  %1436 = vmatprep.subr.bf16.mxu0 %v1644_v0 }
  0x33   :  { %1442 = vmatprep.subr.bf16.mxu1 %v1644_v0 }
  0x35   :  { %1106 = vmatmul.mubr.f32.vlgmr.msra.gmra.mrb[0].mxu1 %v207_v34  ;;  %1438 = vmatpush3.bf16.msra.mxu0 %v1801_v30 }
  0x36   :  { %1444 = vmatpush3.bf16.msra.mxu1 %v1712_v5  ;;  %1175 = vmatprep.mubr.msk.f32.mxu1 %vm1645_vm0, %v1646_v1 }
  0x37   :  { %1445 = vmatprep.subr.bf16.mxu1 %v1644_v0  ;;  %1439 = vmatprep.subr.bf16.mxu0 %v1644_v0 }
  0x39   :  { %1441 = vmatpush3.bf16.msra.mxu0 %v1813_v33 }
  0x3a   :  { %1447 = vmatpush3.bf16.msra.mxu1 %v1718_v7  ;;  %1466 = vmatprep.subr.bf16.mxu0 %v1644_v0 }
  0x3b   :  { %1448 = vmatprep.subr.bf16.mxu1 %v1644_v0 }
  0x3e   :  { %1450 = vmatpush3.bf16.msra.mxu1 %v1738_v14 }
  0x3f   :  { %1451 = vmatprep.subr.bf16.mxu1 %v1644_v0 }
  0x42   :  { %1453 = vmatpush3.bf16.msra.mxu1 %v1755_v19 }
  0x43   :  { %1454 = vmatprep.subr.bf16.mxu1 %v1644_v0 }
  0x46   :  { %1456 = vmatpush3.bf16.msra.mxu1 %v1775_v24 }
  0x47   :  { %1457 = vmatprep.subr.bf16.mxu1 %v1644_v0 }
  0x4a   :  { %1459 = vmatpush3.bf16.msra.mxu1 %v1789_v27 }
  0x4b   :  { %1460 = vmatprep.subr.bf16.mxu1 %v1644_v0 }
  0x4e   :  { %1462 = vmatpush3.bf16.msra.mxu1 %v1801_v30 }
  0x4f   :  { %1463 = vmatprep.subr.bf16.mxu1 %v1644_v0 }
  0x52   :  { %1465 = vmatpush3.bf16.msra.mxu1 %v1813_v33 }
  0x53   :  { %1490 = vmatprep.subr.bf16.mxu1 %v1644_v0 }
  0xef   :  { %v1063_v38 = vpop.f32.mrb[0].mxu0 }
  0xf0   :  { %v152_v39 = vpop.f32.mrb[1].mxu0  ;;  %v158_v52 = vadd.f32 %v1063_v38, %v1866_v42 }
  0xf1   :  { %v153_v43 = vadd.f32 %v1866_v42, %v152_v39 }
  0xf3   :  { %v1861_v40 = vpop.f32.mrb[2].mxu0 }
  0xf4   :  { %v162_v41 = vpop.f32.mrb[3].mxu0  ;;  %v168_v62 = vadd.f32 %v1861_v40, %v1866_v42  ;;  %v798_v40 = vld [vmem:[#allocation2 + $0x70] sm:$0xff] }
  0xf5   :  { %v163_v57 = vadd.f32 %v1866_v42, %v162_v41  ;;  %v799_v41 = vld [vmem:[#allocation2 + $0x78] sm:$0xff] }
  0xf7   :  { %v1887_v48 = vpop.f32.mrb[4].mxu0 }
  0xf8   :  { %v1889_v49 = vpop.f32.mrb[5].mxu0 }
  0xf9   :  { %v173_v6 = vadd.f32 %v1866_v42, %v1889_v49 }
  0xfb   :  { %v1891_v50 = vpop.f32.mrb[6].mxu0 }
  0xfc   :  { %v1893_v51 = vpop.f32.mrb[7].mxu0 }
  0xfd   :  { %v183_v35 = vadd.f32 %v1866_v42, %v1893_v51 }
 0x108   :  { %v274_v44 = vpop.f32.mrb[0].mxu1 }
 0x109   :  { %v278_v45 = vadd.f32 %v274_v44, %v153_v43  ;;  %v1107_v46 = vpop.f32.mrb[1].mxu1  ;;  %v1608_v43 = vpack.c.bf16 %v799_v41, %v798_v40  ;;  %v188_v44 = vadd.f32 %v1891_v50, %v1866_v42 }
 0x10b   :  { %v279_v47 = vmax.f32 %v278_v45, 0.0 }
 0x10d   :  { %1141 = vmatmul.mubr.f32.vlgmr.msra.gmra.mrb[8].mxu0 %v279_v47 }
 0x10e   :  { %1468 = vmatpush3.bf16.msra.mxu0 %v1712_v5  ;;  %1210 = vmatprep.mubr.msk.f32.mxu0 %vm1645_vm0, %v1646_v1 }
 0x10f   :  { %1469 = vmatprep.subr.bf16.mxu0 %v1644_v0 }
 0x112   :  { %1471 = vmatpush3.bf16.msra.mxu0 %v1718_v7 }
 0x113   :  { %1472 = vmatprep.subr.bf16.mxu0 %v1644_v0 }
 0x116   :  { %1474 = vmatpush3.bf16.msra.mxu0 %v1738_v14 }
 0x117   :  { %1475 = vmatprep.subr.bf16.mxu0 %v1644_v0 }
 0x11a   :  { %1477 = vmatpush3.bf16.msra.mxu0 %v1755_v19 }
 0x11b   :  { %1478 = vmatprep.subr.bf16.mxu0 %v1644_v0 }
 0x11e   :  { %1480 = vmatpush3.bf16.msra.mxu0 %v1775_v24 }
 0x11f   :  { %1481 = vmatprep.subr.bf16.mxu0 %v1644_v0 }
 0x122   :  { %1483 = vmatpush3.bf16.msra.mxu0 %v1789_v27 }
 0x123   :  { %1484 = vmatprep.subr.bf16.mxu0 %v1644_v0 }
 0x126   :  { %1486 = vmatpush3.bf16.msra.mxu0 %v1801_v30 }
 0x127   :  { %1487 = vmatprep.subr.bf16.mxu0 %v1644_v0 }
 0x12a   :  { %1489 = vmatpush3.bf16.msra.mxu0 %v1813_v33 }
 0x12b   :  { %1514 = vmatprep.subr.bf16.mxu0 %v1644_v0 }
 0x1e0   :  { %v346_v53 = vpop.f32.mrb[8].mxu0 }
 0x1e1   :  { %v350_v54 = vadd.f32 %v346_v53, %v158_v52  ;;  %v1142_v55 = vpop.f32.mrb[9].mxu0 }
 0x1e3   :  { %v351_v56 = vmax.f32 %v350_v54, 0.0 }
 0x1e5   :  { %1176 = vmatmul.mubr.f32.vlgmr.msra.gmra.mrb[2].mxu1 %v351_v56 }
 0x1e6   :  { %1492 = vmatpush3.bf16.msra.mxu1 %v1712_v5  ;;  %1245 = vmatprep.mubr.msk.f32.mxu1 %vm1645_vm0, %v1646_v1 }
 0x1e7   :  { %1493 = vmatprep.subr.bf16.mxu1 %v1644_v0 }
 0x1ea   :  { %1495 = vmatpush3.bf16.msra.mxu1 %v1718_v7 }
 0x1eb   :  { %1496 = vmatprep.subr.bf16.mxu1 %v1644_v0 }
 0x1ee   :  { %1498 = vmatpush3.bf16.msra.mxu1 %v1738_v14 }
 0x1ef   :  { %1499 = vmatprep.subr.bf16.mxu1 %v1644_v0 }
 0x1f2   :  { %1501 = vmatpush3.bf16.msra.mxu1 %v1755_v19 }
 0x1f3   :  { %1502 = vmatprep.subr.bf16.mxu1 %v1644_v0 }
 0x1f6   :  { %1504 = vmatpush3.bf16.msra.mxu1 %v1775_v24 }
 0x1f7   :  { %1505 = vmatprep.subr.bf16.mxu1 %v1644_v0 }
 0x1fa   :  { %1507 = vmatpush3.bf16.msra.mxu1 %v1789_v27 }
 0x1fb   :  { %1508 = vmatprep.subr.bf16.mxu1 %v1644_v0 }
 0x1fe   :  { %1510 = vmatpush3.bf16.msra.mxu1 %v1801_v30 }
 0x1ff   :  { %1511 = vmatprep.subr.bf16.mxu1 %v1644_v0 }
 0x202   :  { %1513 = vmatpush3.bf16.msra.mxu1 %v1813_v33 }
 0x203   :  { %1538 = vmatprep.subr.bf16.mxu1 %v1644_v0 }
 0x2b8   :  { %v418_v58 = vpop.f32.mrb[2].mxu1 }
 0x2b9   :  { %v422_v59 = vadd.f32 %v418_v58, %v163_v57  ;;  %v1177_v60 = vpop.f32.mrb[3].mxu1 }
 0x2bb   :  { %v423_v61 = vmax.f32 %v422_v59, 0.0 }
 0x2bd   :  { %1211 = vmatmul.mubr.f32.vlgmr.msra.gmra.mrb[10].mxu0 %v423_v61 }
 0x2be   :  { %1516 = vmatpush3.bf16.msra.mxu0 %v1712_v5  ;;  %1280 = vmatprep.mubr.msk.f32.mxu0 %vm1645_vm0, %v1646_v1 }
 0x2bf   :  { %1517 = vmatprep.subr.bf16.mxu0 %v1644_v0 }
 0x2c2   :  { %1519 = vmatpush3.bf16.msra.mxu0 %v1718_v7 }
 0x2c3   :  { %1520 = vmatprep.subr.bf16.mxu0 %v1644_v0 }
 0x2c6   :  { %1522 = vmatpush3.bf16.msra.mxu0 %v1738_v14 }
 0x2c7   :  { %1523 = vmatprep.subr.bf16.mxu0 %v1644_v0 }
 0x2ca   :  { %1525 = vmatpush3.bf16.msra.mxu0 %v1755_v19 }
 0x2cb   :  { %1526 = vmatprep.subr.bf16.mxu0 %v1644_v0 }
 0x2ce   :  { %1528 = vmatpush3.bf16.msra.mxu0 %v1775_v24 }
 0x2cf   :  { %1529 = vmatprep.subr.bf16.mxu0 %v1644_v0 }
 0x2d2   :  { %1531 = vmatpush3.bf16.msra.mxu0 %v1789_v27 }
 0x2d3   :  { %1532 = vmatprep.subr.bf16.mxu0 %v1644_v0 }
 0x2d6   :  { %1534 = vmatpush3.bf16.msra.mxu0 %v1801_v30 }
 0x2d7   :  { %1535 = vmatprep.subr.bf16.mxu0 %v1644_v0 }
 0x2da   :  { %1537 = vmatpush3.bf16.msra.mxu0 %v1813_v33 }
 0x2db   :  { %1562 = vmatprep.subr.bf16.mxu0 %v1644_v0 }
 0x390   :  { %v490_v63 = vpop.f32.mrb[10].mxu0 }
 0x391   :  { %v494_v2 = vadd.f32 %v490_v63, %v168_v62  ;;  %v1212_v3 = vpop.f32.mrb[11].mxu0 }
 0x393   :  { %v495_v4 = vmax.f32 %v494_v2, 0.0 }
 0x395   :  { %1246 = vmatmul.mubr.f32.vlgmr.msra.gmra.mrb[4].mxu1 %v495_v4 }
 0x396   :  { %1540 = vmatpush3.bf16.msra.mxu1 %v1712_v5  ;;  %1315 = vmatprep.mubr.msk.f32.mxu1 %vm1645_vm0, %v1646_v1 }
 0x397   :  { %1541 = vmatprep.subr.bf16.mxu1 %v1644_v0 }
 0x39a   :  { %1543 = vmatpush3.bf16.msra.mxu1 %v1718_v7 }
 0x39b   :  { %1544 = vmatprep.subr.bf16.mxu1 %v1644_v0 }
 0x39e   :  { %1546 = vmatpush3.bf16.msra.mxu1 %v1738_v14 }
 0x39f   :  { %1547 = vmatprep.subr.bf16.mxu1 %v1644_v0 }
 0x3a2   :  { %1549 = vmatpush3.bf16.msra.mxu1 %v1755_v19 }
 0x3a3   :  { %1550 = vmatprep.subr.bf16.mxu1 %v1644_v0 }
 0x3a6   :  { %1552 = vmatpush3.bf16.msra.mxu1 %v1775_v24 }
 0x3a7   :  { %1553 = vmatprep.subr.bf16.mxu1 %v1644_v0 }
 0x3aa   :  { %1555 = vmatpush3.bf16.msra.mxu1 %v1789_v27 }
 0x3ab   :  { %1556 = vmatprep.subr.bf16.mxu1 %v1644_v0 }
 0x3ae   :  { %1558 = vmatpush3.bf16.msra.mxu1 %v1801_v30 }
 0x3af   :  { %1559 = vmatprep.subr.bf16.mxu1 %v1644_v0 }
 0x3b2   :  { %1561 = vmatpush3.bf16.msra.mxu1 %v1813_v33 }
 0x3b3   :  { %1586 = vmatprep.subr.bf16.mxu1 %v1644_v0 }
 0x468   :  { %v562_v8 = vpop.f32.mrb[4].mxu1 }
 0x469   :  { %v566_v9 = vadd.f32 %v562_v8, %v173_v6  ;;  %v1247_v10 = vpop.f32.mrb[5].mxu1 }
 0x46b   :  { %v567_v11 = vmax.f32 %v566_v9, 0.0 }
 0x46d   :  { %1281 = vmatmul.mubr.f32.vlgmr.msra.gmra.mrb[12].mxu0 %v567_v11 }
 0x46e   :  { %1564 = vmatpush3.bf16.msra.mxu0 %v1712_v5  ;;  %1350 = vmatprep.mubr.msk.f32.mxu0 %vm1645_vm0, %v1646_v1  ;;  %v178_v5 = vadd.f32 %v1887_v48, %v1866_v42 }
 0x46f   :  { %1565 = vmatprep.subr.bf16.mxu0 %v1644_v0 }
 0x472   :  { %1567 = vmatpush3.bf16.msra.mxu0 %v1718_v7 }
 0x473   :  { %1568 = vmatprep.subr.bf16.mxu0 %v1644_v0 }
 0x476   :  { %1570 = vmatpush3.bf16.msra.mxu0 %v1738_v14 }
 0x477   :  { %1571 = vmatprep.subr.bf16.mxu0 %v1644_v0 }
 0x47a   :  { %1573 = vmatpush3.bf16.msra.mxu0 %v1755_v19  ;;  %v787_v19 = vld [vmem:[#allocation2 + $0x18] sm:$0xff] }
 0x47b   :  { %1574 = vmatprep.subr.bf16.mxu0 %v1644_v0  ;;  %v1590_v20 = vpack.c.bf16 %v787_v19, %v786_v17 }
 0x47e   :  { %1576 = vmatpush3.bf16.msra.mxu0 %v1775_v24  ;;  %v790_v24 = vld [vmem:[#allocation2 + $0x30] sm:$0xff] }
 0x47f   :  { %1577 = vmatprep.subr.bf16.mxu0 %v1644_v0  ;;  %v1596_v26 = vpack.c.bf16 %v791_v25, %v790_v24 }
 0x482   :  { %1579 = vmatpush3.bf16.msra.mxu0 %v1789_v27  ;;  %v793_v27 = vld [vmem:[#allocation2 + $0x48] sm:$0xff] }
 0x483   :  { %1580 = vmatprep.subr.bf16.mxu0 %v1644_v0 }
 0x486   :  { %1582 = vmatpush3.bf16.msra.mxu0 %v1801_v30  ;;  %v795_v30 = vld [vmem:[#allocation2 + $0x58] sm:$0xff] }
 0x487   :  { %1583 = vmatprep.subr.bf16.mxu0 %v1644_v0  ;;  %v1602_v31 = vpack.c.bf16 %v795_v30, %v794_v29 }
 0x48a   :  { %1585 = vmatpush3.bf16.msra.mxu0 %v1813_v33  ;;  %v797_v33 = vld [vmem:[#allocation2 + $0x68] sm:$0xff] }
 0x48b   :  { %v1605_v34 = vpack.c.bf16 %v797_v33, %v796_v32 }
 0x540   :  { %v634_v7 = vpop.f32.mrb[12].mxu0 }
 0x541   :  { %v638_v12 = vadd.f32 %v634_v7, %v178_v5  ;;  %v1282_v13 = vpop.f32.mrb[13].mxu0 }
 0x543   :  { %v639_v14 = vmax.f32 %v638_v12, 0.0 }
 0x545   :  { %1316 = vmatmul.mubr.f32.vlgmr.msra.gmra.mrb[6].mxu1 %v639_v14 }
 0x546   :  { %1385 = vmatprep.mubr.msk.f32.mxu1 %vm1645_vm0, %v1646_v1  ;;  %1588 = vmatpush3.bf16.msra.mxu1 %v1587_v18  ;;  %v792_v1 = vld [vmem:[#allocation2 + $0x40] sm:$0xff] }
 0x547   :  { %1589 = vmatprep.subr.bf16.mxu1 %v1644_v0  ;;  %v1599_v28 = vpack.c.bf16 %v793_v27, %v792_v1 }
 0x54a   :  { %1591 = vmatpush3.bf16.msra.mxu1 %v1590_v20 }
 0x54b   :  { %1592 = vmatprep.subr.bf16.mxu1 %v1644_v0 }
 0x54e   :  { %1594 = vmatpush3.bf16.msra.mxu1 %v1593_v23 }
 0x54f   :  { %1595 = vmatprep.subr.bf16.mxu1 %v1644_v0 }
 0x552   :  { %1597 = vmatpush3.bf16.msra.mxu1 %v1596_v26 }
 0x553   :  { %1598 = vmatprep.subr.bf16.mxu1 %v1644_v0 }
 0x556   :  { %1600 = vmatpush3.bf16.msra.mxu1 %v1599_v28 }
 0x557   :  { %1601 = vmatprep.subr.bf16.mxu1 %v1644_v0 }
 0x55a   :  { %1603 = vmatpush3.bf16.msra.mxu1 %v1602_v31 }
 0x55b   :  { %1604 = vmatprep.subr.bf16.mxu1 %v1644_v0 }
 0x55e   :  { %1606 = vmatpush3.bf16.msra.mxu1 %v1605_v34 }
 0x55f   :  { %1607 = vmatprep.subr.bf16.mxu1 %v1644_v0  ;;  %v893_v0 = vld [vmem:[%s1999_s6] ss:$0 sm:$0xff] }
 0x562   :  { %1609 = vmatpush3.bf16.msra.mxu1 %v1608_v43 }
 0x618   :  { %v706_v36 = vpop.f32.mrb[6].mxu1 }
 0x619   :  { %v710_v37 = vadd.f32 %v706_v36, %v183_v35  ;;  %v1317_v38 = vpop.f32.mrb[7].mxu1 }
 0x61b   :  { %v711_v39 = vmax.f32 %v710_v37, 0.0 }
 0x61d   :  { %1351 = vmatmul.mubr.f32.vlgmr.msra.gmra.mrb[14].mxu0 %v711_v39 }
 0x6f0   :  { %v778_v45 = vpop.f32.mrb[14].mxu0 }
 0x6f1   :  { %v782_v46 = vadd.f32 %v778_v45, %v188_v44  ;;  %v1352_v47 = vpop.f32.mrb[15].mxu0 }
 0x6f3   :  { %v783_v48 = vmax.f32 %v782_v46, 0.0 }
 0x6f5   :  { %1386 = vmatmul.mubr.f32.vlgmr.msra.gmra.mrb[8].mxu1 %v783_v48 }
 0x7c8   :  { %v873_v49 = vpop.f32.mrb[8].mxu1 }
 0x7c9   :  { %v874_v51 = vadd.f32 %v893_v0, %v873_v49  ;;  %v1387_v52 = vpop.f32.mrb[9].mxu1 }
 0x7cb   :  { %877 = vst [vmem:[%s2000_s7] sm:$0xff] %v874_v51 }
 0x7cc   :  { %882 = vsyncpa [#allocation3], 1 }

</bundles_post_ra>
